<compile_context>
chip_gen: v7x
topology: tpu7x:2x2x1
jax: 0.10.0
libtpu: 0.0.40
codegen_flags: <defaults>
</compile_context>

<pallas_src>
import functools

import jax
import jax.numpy as jnp
from jax.experimental import pallas as pl
from jax.experimental.pallas import tpu as pltpu


def _pinn_kernel(num_hidden_layers,
                 x_ref, w_in_ref, b_in_ref, w_h_ref, b_h_ref,
                 w_out_ref, b_out_ref, o_ref):
    # x_ref:     (1, TB)        batch tile, batch on lanes
    # w_in_ref:  (H, 1)         input-layer weight column (W_in^T)
    # b_in_ref:  (H, 1)         input-layer bias column
    # w_h_ref:   (Ls, H, H)     hidden weights, already transposed (out, in)
    # b_h_ref:   (Ls, H, 1)     hidden biases as columns
    # w_out_ref: (H, 1)         output-layer weight column
    # b_out_ref: (1, 1)
    # o_ref:     (1, TB)
    x = x_ref[...]                                          # (1, TB)

    # Input layer: K=1 contraction -> VPU broadcast outer product.
    # (dropout with rate 0.0 is the identity — omitted)
    h = jnp.tanh(w_in_ref[...] * x + b_in_ref[...])         # (H, TB)

    # Hidden layers (static unroll — L is small and known at trace time).
    # Lane-dense MXU matmul: (H, H) @ (H, TB), f32 accumulation.
    for l in range(num_hidden_layers):
        h = jnp.tanh(
            jnp.dot(w_h_ref[l], h, preferred_element_type=jnp.float32)
            + b_h_ref[l]
        )

    # Output layer: N=1 contraction -> multiply + cross-sublane reduce (XLU).
    o_ref[...] = (
        jnp.sum(h * w_out_ref[...], axis=0, keepdims=True)  # (1, TB)
        + b_out_ref[...]
    )


def _round_up(n, m):
    return ((n + m - 1) // m) * m


def pinn_forward(x, params, *, num_hidden_layers, block_batch=1024):
    """Fused PINN forward pass.  x: (N, 1) float32 -> (N, 1) float32."""
    N, in_dim = x.shape
    assert in_dim == 1
    H = params["w_in"].shape[1]
    L = int(num_hidden_layers)

    # --- choose a lane-aligned batch tile ------------------------------------
    lane_tiles = -(-N // 128)                  # ceil(N / 128)
    if lane_tiles >= 2:
        # Keep >= 2 grid steps so the batch axis can shard across TensorCores,
        # but keep tiles as large as block_batch allows to amortize per-step
        # overhead.
        half_tiles = -(-lane_tiles // 2)
        TB = max(128, min(block_batch, half_tiles * 128))
    else:
        TB = 128

    # --- lay the batch out on the lane axis ----------------------------------
    x_t = x.reshape(1, N)                      # (N,1) -> (1,N): contiguous reshape
    Np = _round_up(N, TB)
    if Np != N:                                # only ragged batches pay a pad copy
        x_t = jnp.pad(x_t, ((0, 0), (0, Np - N)))

    # Transposed weight views for the lane-major kernel (one-time, tiny).
    w_in_t = params["w_in"].T                  # (H, 1)
    b_in_t = params["b_in"].T                  # (H, 1)
    if L > 0:
        w_h_t = jnp.swapaxes(params["w_h"], 1, 2)   # (L, H_out, H_in)
        b_h_t = params["b_h"][:, :, None]            # (L, H, 1)
    else:
        # Dummy single-slot stacks so BlockSpec shapes stay non-empty; the
        # kernel never reads them when L == 0.
        w_h_t = jnp.zeros((1, H, H), jnp.float32)
        b_h_t = jnp.zeros((1, H, 1), jnp.float32)
    Ls = w_h_t.shape[0]
    w_out = params["w_out"]                    # (H, 1)
    b_out = params["b_out"]                    # (1, 1)

    kernel = functools.partial(_pinn_kernel, L)

    out = pl.pallas_call(
        kernel,
        out_shape=jax.ShapeDtypeStruct((1, Np), jnp.float32),
        grid_spec=pltpu.PrefetchScalarGridSpec(
            num_scalar_prefetch=0,
            grid=(Np // TB,),
            in_specs=[
                pl.BlockSpec((1, TB), lambda i: (0, i)),         # x^T tile
                pl.BlockSpec((H, 1), lambda i: (0, 0)),          # w_in^T
                pl.BlockSpec((H, 1), lambda i: (0, 0)),          # b_in^T
                pl.BlockSpec((Ls, H, H), lambda i: (0, 0, 0)),   # hidden W^T stack
                pl.BlockSpec((Ls, H, 1), lambda i: (0, 0, 0)),   # hidden biases
                pl.BlockSpec((H, 1), lambda i: (0, 0)),          # w_out
                pl.BlockSpec((1, 1), lambda i: (0, 0)),          # b_out
            ],
            out_specs=pl.BlockSpec((1, TB), lambda i: (0, i)),
        ),
        compiler_params=pltpu.CompilerParams(
            dimension_semantics=("parallel",)),
    )(x_t, w_in_t, b_in_t, w_h_t, b_h_t, w_out, b_out)

    return out[:, :N].reshape(N, 1)


def init_pinn_params(key, num_hidden_layers, num_neurons):
    """Deterministic init mirroring nn.Linear default (U(-1/sqrt(fan_in), ...))."""
    H, L = num_neurons, max(int(num_hidden_layers), 1)
    ks = jax.random.split(key, 6)

    def uni(k, shape, fan_in):
        bound = 1.0 / jnp.sqrt(jnp.float32(fan_in))
        return jax.random.uniform(k, shape, jnp.float32, -bound, bound)

    return {
        "w_in": uni(ks[0], (1, H), 1),
        "b_in": uni(ks[1], (1, H), 1),
        "w_h": uni(ks[2], (L, H, H), H),
        "b_h": uni(ks[3], (L, H), H),
        "w_out": uni(ks[4], (H, 1), H),
        "b_out": uni(ks[5], (1, 1), H),
    }


def pinn_reference(x, params, num_hidden_layers):
    """Plain-JAX reference of the PyTorch forward (tanh activation, dropout=0)."""
    h = jnp.tanh(x @ params["w_in"] + params["b_in"])
    for l in range(num_hidden_layers):
        h = jnp.tanh(h @ params["w_h"][l] + params["b_h"][l][None, :])
    return h @ params["w_out"] + params["b_out"]


if __name__ == "__main__":
    num_hidden_layers = 3
    num_neurons = 32

    key = jax.random.PRNGKey(0)
    k_params, k_x1, k_x2 = jax.random.split(key, 3)
    params = init_pinn_params(k_params, num_hidden_layers, num_neurons)

    # Lane-aligned batch spanning a 2-step grid (exercises megacore sharding).
    x = jax.random.normal(k_x1, (256, 1), dtype=jnp.float32)
    out = jax.block_until_ready(
        pinn_forward(x, params, num_hidden_layers=num_hidden_layers))
    ref = pinn_reference(x, params, num_hidden_layers)
    assert out.shape == (256, 1)
    assert jnp.allclose(out, ref, atol=1e-5, rtol=1e-5), "mismatch vs reference (N=256)"

    # Small ragged batch (exercises the pad-tail path).
    x2 = jax.random.normal(k_x2, (100, 1), dtype=jnp.float32)
    out2 = jax.block_until_ready(
        pinn_forward(x2, params, num_hidden_layers=num_hidden_layers))
    ref2 = pinn_reference(x2, params, num_hidden_layers)
    assert out2.shape == (100, 1)
    assert jnp.allclose(out2, ref2, atol=1e-5, rtol=1e-5), "mismatch vs reference (N=100)"

    print("KERNEL_OK")
</pallas_src>

<mosaic_0001>
module attributes {stable_mosaic.version = 11 : i64} {
  func.func @_pinn_kernel(%arg0: i32, %arg1: memref<1x128xf32, #tpu.memory_space<vmem>>, %arg2: memref<32x1xf32, #tpu.memory_space<vmem>>, %arg3: memref<32x1xf32, #tpu.memory_space<vmem>>, %arg4: memref<3x32x32xf32, #tpu.memory_space<vmem>>, %arg5: memref<3x32x1xf32, #tpu.memory_space<vmem>>, %arg6: memref<32x1xf32, #tpu.memory_space<vmem>>, %arg7: memref<1x1xf32, #tpu.memory_space<vmem>>, %arg8: memref<1x128xf32, #tpu.memory_space<vmem>>) attributes {dimension_semantics = [#tpu.dimension_semantics<parallel>], iteration_bounds = array<i64: 2>, scalar_prefetch = 0 : i64, scratch_operands = 0 : i64, tpu.core_type = #tpu.core_type<tc>, window_params = [{transform_indices = @transform_0, window_bounds = array<i64: 1, 128>}, {pipeline_mode = #tpu.pipeline_mode<synchronous>, transform_indices = @transform_1, window_bounds = array<i64: 32, 1>}, {pipeline_mode = #tpu.pipeline_mode<synchronous>, transform_indices = @transform_2, window_bounds = array<i64: 32, 1>}, {pipeline_mode = #tpu.pipeline_mode<synchronous>, transform_indices = @transform_3, window_bounds = array<i64: 3, 32, 32>}, {pipeline_mode = #tpu.pipeline_mode<synchronous>, transform_indices = @transform_4, window_bounds = array<i64: 3, 32, 1>}, {pipeline_mode = #tpu.pipeline_mode<synchronous>, transform_indices = @transform_5, window_bounds = array<i64: 32, 1>}, {pipeline_mode = #tpu.pipeline_mode<synchronous>, transform_indices = @transform_6, window_bounds = array<i64: 1, 1>}, {transform_indices = @transform_7, window_bounds = array<i64: 1, 128>}]} {
    %c0 = arith.constant 0 : index
    %c0_0 = arith.constant 0 : index
    %0 = vector.load %arg1[%c0, %c0_0] : memref<1x128xf32, #tpu.memory_space<vmem>>, vector<1x128xf32>
    %c0_1 = arith.constant 0 : index
    %c0_2 = arith.constant 0 : index
    %1 = vector.load %arg2[%c0_1, %c0_2] : memref<32x1xf32, #tpu.memory_space<vmem>>, vector<32x1xf32>
    %2 = vector.broadcast %1 : vector<32x1xf32> to vector<32x128xf32>
    %3 = vector.broadcast %0 : vector<1x128xf32> to vector<32x128xf32>
    %4 = arith.mulf %2, %3 : vector<32x128xf32>
    %c0_3 = arith.constant 0 : index
    %c0_4 = arith.constant 0 : index
    %5 = vector.load %arg3[%c0_3, %c0_4] : memref<32x1xf32, #tpu.memory_space<vmem>>, vector<32x1xf32>
    %6 = vector.broadcast %5 : vector<32x1xf32> to vector<32x128xf32>
    %7 = arith.addf %4, %6 : vector<32x128xf32>
    %8 = math.tanh %7 : vector<32x128xf32>
    %c0_5 = arith.constant 0 : index
    %c0_6 = arith.constant 0 : index
    %c0_7 = arith.constant 0 : index
    %9 = vector.load %arg4[%c0_5, %c0_6, %c0_7] : memref<3x32x32xf32, #tpu.memory_space<vmem>>, vector<1x32x32xf32>
    %10 = vector.shape_cast %9 : vector<1x32x32xf32> to vector<32x32xf32>
    %cst = arith.constant dense<0.000000e+00> : vector<32x128xf32>
    %11 = tpu.matmul %10, %8, %cst {dimension_numbers = #tpu.dot_dimension_numbers<[1], [0], [0], [1], [0, 0, 1, 1], [], []>} : vector<32x32xf32>, vector<32x128xf32>, vector<32x128xf32> -> vector<32x128xf32>
    %c0_8 = arith.constant 0 : index
    %c0_9 = arith.constant 0 : index
    %c0_10 = arith.constant 0 : index
    %12 = vector.load %arg5[%c0_8, %c0_9, %c0_10] : memref<3x32x1xf32, #tpu.memory_space<vmem>>, vector<1x32x1xf32>
    %13 = vector.shape_cast %12 : vector<1x32x1xf32> to vector<32x1xf32>
    %14 = vector.broadcast %13 : vector<32x1xf32> to vector<32x128xf32>
    %15 = arith.addf %11, %14 : vector<32x128xf32>
    %16 = math.tanh %15 : vector<32x128xf32>
    %c1 = arith.constant 1 : index
    %c0_11 = arith.constant 0 : index
    %c0_12 = arith.constant 0 : index
    %17 = vector.load %arg4[%c1, %c0_11, %c0_12] : memref<3x32x32xf32, #tpu.memory_space<vmem>>, vector<1x32x32xf32>
    %18 = vector.shape_cast %17 : vector<1x32x32xf32> to vector<32x32xf32>
    %cst_13 = arith.constant dense<0.000000e+00> : vector<32x128xf32>
    %19 = tpu.matmul %18, %16, %cst_13 {dimension_numbers = #tpu.dot_dimension_numbers<[1], [0], [0], [1], [0, 0, 1, 1], [], []>} : vector<32x32xf32>, vector<32x128xf32>, vector<32x128xf32> -> vector<32x128xf32>
    %c1_14 = arith.constant 1 : index
    %c0_15 = arith.constant 0 : index
    %c0_16 = arith.constant 0 : index
    %20 = vector.load %arg5[%c1_14, %c0_15, %c0_16] : memref<3x32x1xf32, #tpu.memory_space<vmem>>, vector<1x32x1xf32>
    %21 = vector.shape_cast %20 : vector<1x32x1xf32> to vector<32x1xf32>
    %22 = vector.broadcast %21 : vector<32x1xf32> to vector<32x128xf32>
    %23 = arith.addf %19, %22 : vector<32x128xf32>
    %24 = math.tanh %23 : vector<32x128xf32>
    %c2 = arith.constant 2 : index
    %c0_17 = arith.constant 0 : index
    %c0_18 = arith.constant 0 : index
    %25 = vector.load %arg4[%c2, %c0_17, %c0_18] : memref<3x32x32xf32, #tpu.memory_space<vmem>>, vector<1x32x32xf32>
    %26 = vector.shape_cast %25 : vector<1x32x32xf32> to vector<32x32xf32>
    %cst_19 = arith.constant dense<0.000000e+00> : vector<32x128xf32>
    %27 = tpu.matmul %26, %24, %cst_19 {dimension_numbers = #tpu.dot_dimension_numbers<[1], [0], [0], [1], [0, 0, 1, 1], [], []>} : vector<32x32xf32>, vector<32x128xf32>, vector<32x128xf32> -> vector<32x128xf32>
    %c2_20 = arith.constant 2 : index
    %c0_21 = arith.constant 0 : index
    %c0_22 = arith.constant 0 : index
    %28 = vector.load %arg5[%c2_20, %c0_21, %c0_22] : memref<3x32x1xf32, #tpu.memory_space<vmem>>, vector<1x32x1xf32>
    %29 = vector.shape_cast %28 : vector<1x32x1xf32> to vector<32x1xf32>
    %30 = vector.broadcast %29 : vector<32x1xf32> to vector<32x128xf32>
    %31 = arith.addf %27, %30 : vector<32x128xf32>
    %32 = math.tanh %31 : vector<32x128xf32>
    %c0_23 = arith.constant 0 : index
    %c0_24 = arith.constant 0 : index
    %33 = vector.load %arg6[%c0_23, %c0_24] : memref<32x1xf32, #tpu.memory_space<vmem>>, vector<32x1xf32>
    %34 = vector.broadcast %33 : vector<32x1xf32> to vector<32x128xf32>
    %35 = arith.mulf %32, %34 : vector<32x128xf32>
    %cst_25 = arith.constant dense<0.000000e+00> : vector<128xf32>
    %36 = vector.multi_reduction <add>, %35, %cst_25 [0] : vector<32x128xf32> to vector<128xf32>
    %37 = vector.shape_cast %36 : vector<128xf32> to vector<1x128xf32>
    %c0_26 = arith.constant 0 : index
    %c0_27 = arith.constant 0 : index
    %38 = vector.load %arg7[%c0_26, %c0_27] : memref<1x1xf32, #tpu.memory_space<vmem>>, vector<1x1xf32>
    %39 = vector.broadcast %38 : vector<1x1xf32> to vector<1x128xf32>
    %40 = arith.addf %37, %39 : vector<1x128xf32>
    %c0_28 = arith.constant 0 : index
    %c0_29 = arith.constant 0 : index
    %41 = vector.load %arg8[%c0_28, %c0_29] : memref<1x128xf32, #tpu.memory_space<vmem>>, vector<1x128xf32>
    tpu.vector_store %arg8[%c0_28, %c0_29], %40 {strides = array<i32>} : memref<1x128xf32, #tpu.memory_space<vmem>>, vector<1x128xf32>,
    return
  }
  func.func @transform_0(%arg0: i32) -> (i32, i32) {
    %c0_i32 = arith.constant 0 : i32
    %c0_i32_0 = arith.constant 0 : i32
    return %c0_i32, %arg0 : i32, i32
  }
  func.func @transform_1(%arg0: i32) -> (i32, i32) {
    %c0_i32 = arith.constant 0 : i32
    %c0_i32_0 = arith.constant 0 : i32
    %c0_i32_1 = arith.constant 0 : i32
    return %c0_i32, %c0_i32_0 : i32, i32
  }
  func.func @transform_2(%arg0: i32) -> (i32, i32) {
    %c0_i32 = arith.constant 0 : i32
    %c0_i32_0 = arith.constant 0 : i32
    %c0_i32_1 = arith.constant 0 : i32
    return %c0_i32, %c0_i32_0 : i32, i32
  }
  func.func @transform_3(%arg0: i32) -> (i32, i32, i32) {
    %c0_i32 = arith.constant 0 : i32
    %c0_i32_0 = arith.constant 0 : i32
    %c0_i32_1 = arith.constant 0 : i32
    %c0_i32_2 = arith.constant 0 : i32
    return %c0_i32, %c0_i32_0, %c0_i32_1 : i32, i32, i32
  }
  func.func @transform_4(%arg0: i32) -> (i32, i32, i32) {
    %c0_i32 = arith.constant 0 : i32
    %c0_i32_0 = arith.constant 0 : i32
    %c0_i32_1 = arith.constant 0 : i32
    %c0_i32_2 = arith.constant 0 : i32
    return %c0_i32, %c0_i32_0, %c0_i32_1 : i32, i32, i32
  }
  func.func @transform_5(%arg0: i32) -> (i32, i32) {
    %c0_i32 = arith.constant 0 : i32
    %c0_i32_0 = arith.constant 0 : i32
    %c0_i32_1 = arith.constant 0 : i32
    return %c0_i32, %c0_i32_0 : i32, i32
  }
  func.func @transform_6(%arg0: i32) -> (i32, i32) {
    %c0_i32 = arith.constant 0 : i32
    %c0_i32_0 = arith.constant 0 : i32
    %c0_i32_1 = arith.constant 0 : i32
    return %c0_i32, %c0_i32_0 : i32, i32
  }
  func.func @transform_7(%arg0: i32) -> (i32, i32) {
    %c0_i32 = arith.constant 0 : i32
    %c0_i32_0 = arith.constant 0 : i32
    return %c0_i32, %arg0 : i32, i32
  }
}

</mosaic_0001>

<bundles_post_ra>
// kernel: tpu_custom_call.1
= control target key start
LH: loop header
LB: loop body
LE: loop exit
PB: predicated region body
PF: predicated region fallthrough
CT: control target
= control target key end

     0   :  { %s1378_s0 = inlined_call_operand.vmem [shape: f32[1,256], index: 0, kind: input, shape index: {}]   ;;  %s1379_s1 = inlined_call_operand.vmem [shape: f32[32,1], index: 1, kind: input, shape index: {}]   ;;  %s1380_s2 = inlined_call_operand.vmem [shape: f32[32,1], index: 2, kind: input, shape index: {}]   ;;  %s1381_s3 = inlined_call_operand.vmem [shape: f32[3,32,32], index: 3, kind: input, shape index: {}]   ;;  %s1382_s4 = inlined_call_operand.vmem [shape: f32[3,32,1], index: 4, kind: input, shape index: {}]   ;;  %s1383_s5 = inlined_call_operand.vmem [shape: f32[32,1], index: 5, kind: input, shape index: {}]   ;;  %s1384_s6 = inlined_call_operand.<no memory space> [shape: f32[1,1], index: 6, kind: input, shape index: {}]   ;;  %s1385_s7 = inlined_call_operand.hbm [shape: f32[1,256], index: 7, kind: output, shape index: {}]  }
   0x1   :  { %v12_v0 = vstv %s1384_s6 }
   0x2   :  { %13 = vst [vmem:[#allocation2] sm:$0x1] %v12_v0 }
   0x3   :  { %14 = vsyncpa [#allocation4], 0 }
   0x4   :  { %16 = vsyncpa [#allocation4 + $0x1], 0  ;;  %s1158_s26 = smov 0   ;;  %s1160_s27 = smov 0  }
   0x5   :  { %s1162_s28 = smov 0   ;;  %s1164_s29 = smov 0  }
   0x6 LB: > { %s1179_s6 = sadd.s32 4294967295, %s1111_s29   ;;  %s845_s30 = sadd.s32 4294967294, %s1111_s29   ;;  %s1111_s29 = sphi %s1164_s29, %s1391_s29   ;;  %s1107_s28 = sphi %s1162_s28, %s1390_s28   ;;  %s1103_s27 = sphi %s1160_s27, %s1389_s27   ;;  %s1099_s26 = sphi %s1158_s26, %s1388_s26  }
   0x7   : > { %s1183_s8 = sadd.s32 1, %s1111_s29   ;;  %s181_s9 = sadd.s32 1, %s1107_s28 }
   0x8   : > { %s178_s10 = ssub.s32 %s1111_s29, %s1183_s8  ;;  %p191_p0 = scmp.ne.s32.totalorder %s1107_s28, %s1103_s27 }
   0x9   : > { %p179_p1 = scmp.eq.s32.totalorder %s178_s10, 0  ;;  %p192_p2 = scmp.eq.s32.totalorder %s1179_s6, 1 }
   0xa   : > { %p197_p3 = scmp.ne.s32.totalorder %s1103_s27, %s1099_s26  ;;  %p198_p4 = scmp.eq.s32.totalorder %s845_s30, 1 }
   0xb   : > { %s1194_s11 = scalar_select %p179_p1, %s1107_s28, %s181_s9  }
   0xc   : > { %p1196_p5 = por %p192_p2, %p191_p0  ;;  %p1200_p6 = por %p198_p4, %p197_p3 }
   0xd   : > { %p848_p7 = scmp.ge.s32.totalorder %s1111_s29, 1  ;;  %p240_p8 = scmp.lt.s32.totalorder %s1111_s29, 3 }
   0xf   : > { %p241_p9 = pnand %p848_p7, %p240_p8 }
  0x10   : > { %v307_v1 = vld [vmem:[%s1380_s2] sm:$0xff] (!%p241_p9)  ;;  %v1113_v3 = vmov (!%p241_p9), 0   ;;  %v308_v4 = vld [vmem:[%s1380_s2 + $0x8] sm:$0xff] (!%p241_p9)  ;;  %v276_v6 = vld [vmem:[%s1379_s1 + $0x18] sm:$0xff] (!%p241_p9)  ;;  %vm367_vm0 = vcmask (!%p241_p9), 261120   ;;  %p269_p10 = scmp.lt.s32.totalorder (!%p241_p9), %s1179_s6, 1 }
  0x11   : > { %244 = sbr.rel (%p241_p9) target bundleno = 912 (0x390), region = 48  ;;  %v273_v2 = vld [vmem:[%s1379_s1] sm:$0xff] (!%p241_p9)  ;;  %1016 = vset.pattern.permute.xlu1 (!%p241_p9), %v1113_v3  ;;  %1015 = vset.pattern.permute.xlu0 (!%p241_p9), %v1113_v3  ;;  %v274_v5 = vld [vmem:[%s1379_s1 + $0x8] sm:$0xff] (!%p241_p9)  ;;  %v275_v7 = vld [vmem:[%s1379_s1 + $0x10] sm:$0xff] (!%p241_p9)  ;;  %s267_s15 = sand.u32 (!%p241_p9), 1, %s1103_s27  }
  0x12   : > { %313 = vperm.xlu1 (!%p241_p9), %1016, %v307_v1   ;;  %279 = vperm.xlu0 (!%p241_p9), %1015, %v273_v2   ;;  %v310_v8 = vld [vmem:[%s1380_s2 + $0x18] sm:$0xff] (!%p241_p9)  ;;  %v309_v9 = vld [vmem:[%s1380_s2 + $0x10] sm:$0xff] (!%p241_p9)  ;;  %v344_v10 = vld [vmem:[%s1382_s4 + $0x8] sm:$0xff] (!%p241_p9)  ;;  %s878_s16 = sshll.u32 (!%p241_p9), %s1179_s6, 4  ;;  %s268_s17 = scalar_lea.vmem (!%p241_p9), [#allocation3], %s267_s15 }
  0x13   : > { %v343_v11 = vld [vmem:[%s1382_s4] sm:$0xff] (!%p241_p9)  ;;  %v346_v12 = vld [vmem:[%s1382_s4 + $0x18] sm:$0xff] (!%p241_p9)  ;;  %v345_v13 = vld [vmem:[%s1382_s4 + $0x10] sm:$0xff] (!%p241_p9)  ;;  %s793_s18 = sshll.u32 (!%p241_p9), %s268_s17, 4  ;;  %s1336_s21 = scalar_lea.hbm (!%p241_p9), %s1385_s7, %s878_s16  ;;  %s1338_s18 = int_to_ptr.vmem [resolvable:$true] %s793_s18 }
  0x14   : > { %v859_v14 = vld [vmem:[%s1382_s4 + $0x28] sm:$0xff] (!%p241_p9)  ;;  %v858_v15 = vld [vmem:[%s1382_s4 + $0x20] sm:$0xff] (!%p241_p9)  ;;  %v861_v16 = vld [vmem:[%s1382_s4 + $0x38] sm:$0xff] (!%p241_p9)  ;;  %s1049_s23 = scalar_lea.vmem (!%p241_p9), %s1338_s18, 16 }
  0x15   : > { %v860_v17 = vld [vmem:[%s1382_s4 + $0x30] sm:$0xff] (!%p241_p9)  ;;  %v871_v18 = vld [vmem:[%s1382_s4 + $0x48] sm:$0xff] (!%p241_p9)  ;;  %v870_v19 = vld [vmem:[%s1382_s4 + $0x40] sm:$0xff] (!%p241_p9)  ;;  %p1050_p11 = scmp.ne.s32.totalorder (!%p241_p9), %s1338_s18, %s1049_s23 }
  0x16   : > { %318 = vperm.xlu1 (!%p241_p9), %1016, %v308_v4   ;;  %284 = vperm.xlu0 (!%p241_p9), %1015, %v274_v5   ;;  %v339_v20 = vld [vmem:[%s1381_s3] sm:$0xff] (!%p241_p9)  ;;  %v873_v21 = vld [vmem:[%s1382_s4 + $0x58] sm:$0xff] (!%p241_p9)  ;;  %v872_v22 = vld [vmem:[%s1382_s4 + $0x50] sm:$0xff] (!%p241_p9) }
  0x17   : > { %913 = vmatprep.mubr.msk.f32.mxu0 (!%p241_p9), %vm367_vm0, %v339_v20  ;;  %v732_v23 = vld [vmem:[%s1383_s5 + $0x8] sm:$0xff] (!%p241_p9)  ;;  %v731_v24 = vld [vmem:[%s1383_s5] sm:$0xff] (!%p241_p9)  ;;  %v734_v25 = vld [vmem:[%s1383_s5 + $0x18] sm:$0xff] (!%p241_p9)  ;;  %p1051_p12 = pnand (!%p241_p9), %p1050_p11, %p1196_p5 }
  0x18   : > { %v733_v26 = vld [vmem:[%s1383_s5 + $0x10] sm:$0xff]  ;;  %v768_v27 = vld [vmem:[#allocation2] sm:$0x1]  ;;  %s270_s19 = scalar_select %p269_p10, %s1179_s6, 1  ;;  %v340_v51 = vld [vmem:[%s1381_s3 + $0x8] sm:$0xff] }
  0x19   : > { %v341_v52 = vld [vmem:[%s1381_s3 + $0x10] sm:$0xff]  ;;  %v342_v53 = vld [vmem:[%s1381_s3 + $0x18] sm:$0xff]  ;;  %v854_v54 = vld [vmem:[%s1381_s3 + $0x20] sm:$0xff]  ;;  %p1052_p13 = pneg %p1051_p12  ;;  %s1114_s6 = smov [#allocation3]  }
  0x1a   : > { %294 = vperm.xlu1 %1016, %v276_v6   ;;  %289 = vperm.xlu0 %1015, %v275_v7   ;;  %s271_s22 = scalar_lea.vmem %s1378_s0, %s270_s19  ;;  %s1053_s24 = sshll.u32 %s1114_s6, 4  ;;  %s1054_s24 = int_to_ptr.vmem [resolvable:$false] %s1053_s24 }
  0x1b   : > { %v849_v28 = vld [vmem:[%s271_s22] ss:$0 sm:$0xff]  ;;  %927 = vmatprep.mubr.msk.f32.mxu1 %vm367_vm0, %v854_v54  ;;  %s781_s22 = scalar_lea.sflag [#allocation4], %s267_s15  ;;  %s1055_s25 = scalar_lea.vmem %s1054_s24, 32 }
  0x1c   : > { %p1056_p0 = scmp.lt.s32.totalorder %s1338_s18, %s1054_s24  ;;  %p1057_p1 = scmp.lt.s32.totalorder %s1055_s25, %s1049_s23 }
  0x1e   : > { %328 = vperm.xlu1 %1016, %v310_v8   ;;  %323 = vperm.xlu0 %1015, %v309_v9   ;;  %v855_v9 = vld [vmem:[%s1381_s3 + $0x28] sm:$0xff]  ;;  %p1058_p2 = por %p1057_p1, %p1056_p0 }
  0x20   : > { %p1059_p3 = pnand %p1058_p2, %p1052_p13 }
  0x22   : > { %354 = vperm.xlu1 %1016, %v344_v10   ;;  %349 = vperm.xlu0 %1015, %v343_v11   ;;  %v856_v10 = vld [vmem:[%s1381_s3 + $0x30] sm:$0xff]  ;;  %v857_v11 = vld [vmem:[%s1381_s3 + $0x38] sm:$0xff] }
  0x26   : > { %364 = vperm.xlu1 %1016, %v346_v12   ;;  %359 = vperm.xlu0 %1015, %v345_v13   ;;  %v866_v12 = vld [vmem:[%s1381_s3 + $0x40] sm:$0xff]  ;;  %v868_v13 = vld [vmem:[%s1381_s3 + $0x50] sm:$0xff] }
  0x2a   : > { %486 = vperm.xlu1 %1016, %v859_v14   ;;  %481 = vperm.xlu0 %1015, %v858_v15  }
  0x2e   : > { %496 = vperm.xlu1 %1016, %v861_v16   ;;  %491 = vperm.xlu0 %1015, %v860_v17  }
  0x32   : > { %617 = vperm.xlu1 %1016, %v871_v18   ;;  %612 = vperm.xlu0 %1015, %v870_v19  }
  0x36   : > { %627 = vperm.xlu1 %1016, %v873_v21   ;;  %622 = vperm.xlu0 %1015, %v872_v22  }
  0x3a   : > { %742 = vperm.xlu1 %1016, %v732_v23   ;;  %737 = vperm.xlu0 %1015, %v731_v24  }
  0x3e   : > { %752 = vperm.xlu1 %1016, %v734_v25   ;;  %747 = vperm.xlu0 %1015, %v733_v26  }
  0x42   : > { %771 = vperm.xlu0 %1015, %v768_v27  }
  0x91   : > { %v314_v29 = vpop.permute.xlu1 %313  ;;  %v280_v30 = vpop.permute.xlu0 %279 }
  0x92   : > { %v303_v31 = vmul.f32 %v849_v28, %v280_v30 }
  0x94   : > { %v331_v32 = vadd.f32 %v314_v29, %v303_v31 }
  0x95   : > { %v319_v33 = vpop.permute.xlu1 %318  ;;  %v285_v34 = vpop.permute.xlu0 %284 }
  0x96   : > { %v304_v35 = vmul.f32 %v849_v28, %v285_v34  ;;  %1017 = vtanh.f32 %v331_v32  ;;  %v867_v32 = vld [vmem:[%s1381_s3 + $0x48] sm:$0xff] }
  0x98   : > { %v332_v36 = vadd.f32 %v319_v33, %v304_v35  ;;  %v869_v33 = vld [vmem:[%s1381_s3 + $0x58] sm:$0xff] }
  0x99   : > { %v295_v37 = vpop.permute.xlu1 %294  ;;  %v290_v38 = vpop.permute.xlu0 %289 }
  0x9a   : > { %1019 = vtanh.f32 %v332_v36  ;;  %v306_v39 = vmul.f32 %v849_v28, %v295_v37  ;;  %v305_v40 = vmul.f32 %v849_v28, %v290_v38 }
  0x9d   : > { %v329_v41 = vpop.permute.xlu1 %328  ;;  %v324_v42 = vpop.permute.xlu0 %323 }
  0x9e   : > { %v334_v43 = vadd.f32 %v329_v41, %v306_v39  ;;  %v333_v44 = vadd.f32 %v324_v42, %v305_v40 }
  0xa0   : > { %1021 = vtanh.f32 %v334_v43  ;;  %v1018_v45 = vpop.eup %1017 }
  0xa1   : > { %1023 = vtanh.f32 %v333_v44  ;;  %v355_v55 = vpop.permute.xlu1 %354  ;;  %v350_v56 = vpop.permute.xlu0 %349 }
  0xa4   : > { %v1020_v46 = vpop.eup %1019 }
  0xa5   : > { %v947_v47 = vpack.c.bf16 %v1020_v46, %v1018_v45  ;;  %v365_v61 = vpop.permute.xlu1 %364  ;;  %v360_v63 = vpop.permute.xlu0 %359 }
  0xa7   : > { %948 = vmatprep.subr.bf16.mxu0 %v947_v47 }
  0xa8   : > { %950 = vmatpush3.bf16.msra.mxu0 %v947_v47 }
  0xa9   : > { %v487_v14 = vpop.permute.xlu1 %486  ;;  %v482_v15 = vpop.permute.xlu0 %481 }
  0xaa   : > { %v1022_v48 = vpop.eup %1021 }
  0xab   : > { %v1024_v49 = vpop.eup %1023 }
  0xac   : > { %v951_v50 = vpack.c.bf16 %v1022_v48, %v1024_v49 }
  0xad   : > { %v497_v20 = vpop.permute.xlu1 %496  ;;  %v492_v22 = vpop.permute.xlu0 %491 }
  0xae   : > { %952 = vmatprep.subr.bf16.mxu0 %v951_v50 }
  0xaf   : > { %954 = vmatpush3.bf16.msra.mxu0 %v951_v50 }
  0xb1   : > { %v613_v34 = vpop.permute.xlu0 %612  ;;  %v618_v35 = vpop.permute.xlu1 %617 }
  0xb2   : > { %914 = vmatmul.mubr.msk.f32.vlgmr.msra.gmra.mrb[0].mxu0 %vm367_vm0, %v340_v51 }
  0xb3   : > { %916 = vmatprep.mubr.msk.f32.mxu0 %vm367_vm0, %v341_v52 }
  0xb5   : > { %v623_v36 = vpop.permute.xlu0 %622  ;;  %v628_v42 = vpop.permute.xlu1 %627 }
  0xb6   : > { %917 = vmatmul.mubr.msk.f32.gmra.mrb[2].mxu0 %vm367_vm0, %v342_v53 }
  0xb7   : > { %941 = vmatprep.mubr.msk.f32.mxu0 %vm367_vm0, %v866_v12 }
  0xb9   : > { %v738_v46 = vpop.permute.xlu0 %737  ;;  %v743_v48 = vpop.permute.xlu1 %742 }
  0xbd   : > { %v748_v54 = vpop.permute.xlu0 %747 }
 0x185   : > { %v915_v57 = vpop.f32.mrb[0].mxu0 }
 0x186   : > { %v452_v58 = vadd.f32 %v915_v57, %v355_v55  ;;  %v446_v59 = vpop.f32.mrb[1].mxu0  ;;  %v753_v57 = vpop.permute.xlu1 %752 }
 0x187   : > { %v447_v60 = vadd.f32 %v446_v59, %v350_v56 }
 0x188   : > { %1025 = vtanh.f32 %v452_v58 }
 0x189   : > { %1027 = vtanh.f32 %v447_v60  ;;  %v918_v62 = vpop.f32.mrb[2].mxu0  ;;  %v774_v60 = vlaneseq }
 0x18a   : > { %v462_v0 = vadd.f32 %v918_v62, %v365_v61  ;;  %v456_v1 = vpop.f32.mrb[3].mxu0 }
 0x18b   : > { %v457_v2 = vadd.f32 %v456_v1, %v360_v63  ;;  %v775_v63 = vshrl.u32 %v774_v60, 7 }
 0x18c   : > { %1029 = vtanh.f32 %v462_v0 }
 0x18d   : > { %1031 = vtanh.f32 %v457_v2  ;;  %v776_v2 = vsub.s32 0, %v775_v63 }
 0x192   : > { %v1026_v3 = vpop.eup %1025 }
 0x193   : > { %v1028_v4 = vpop.eup %1027 }
 0x194   : > { %v955_v5 = vpack.c.bf16 %v1026_v3, %v1028_v4  ;;  %v772_v4 = vpop.permute.xlu0 %771 }
 0x196   : > { %v1030_v6 = vpop.eup %1029  ;;  %956 = vmatprep.subr.bf16.mxu1 %v955_v5 }
 0x197   : > { %v1032_v7 = vpop.eup %1031  ;;  %958 = vmatpush3.bf16.msra.mxu1 %v955_v5 }
 0x198   : > { %v959_v8 = vpack.c.bf16 %v1030_v6, %v1032_v7  ;;  %v777_v6 = vrot.slane %v772_v4, %v776_v2 }
 0x19a   : > { %960 = vmatprep.subr.bf16.mxu1 %v959_v8 }
 0x19b   : > { %962 = vmatpush3.bf16.msra.mxu1 %v959_v8 }
 0x19e   : > { %928 = vmatmul.mubr.msk.f32.vlgmr.msra.gmra.mrb[0].mxu1 %vm367_vm0, %v855_v9 }
 0x19f   : > { %930 = vmatprep.mubr.msk.f32.mxu1 %vm367_vm0, %v856_v10 }
 0x1a2   : > { %931 = vmatmul.mubr.msk.f32.gmra.mrb[2].mxu1 %vm367_vm0, %v857_v11 }
 0x1a3   : > { %944 = vmatprep.mubr.msk.f32.mxu1 %vm367_vm0, %v868_v13 }
 0x271   : > { %v929_v16 = vpop.f32.mrb[0].mxu1 }
 0x272   : > { %v583_v17 = vadd.f32 %v929_v16, %v487_v14  ;;  %v577_v18 = vpop.f32.mrb[1].mxu1 }
 0x273   : > { %v578_v19 = vadd.f32 %v577_v18, %v482_v15 }
 0x274   : > { %1033 = vtanh.f32 %v583_v17 }
 0x275   : > { %1035 = vtanh.f32 %v578_v19  ;;  %v932_v21 = vpop.f32.mrb[2].mxu1 }
 0x276   : > { %v593_v23 = vadd.f32 %v932_v21, %v497_v20  ;;  %v587_v24 = vpop.f32.mrb[3].mxu1 }
 0x277   : > { %v588_v25 = vadd.f32 %v587_v24, %v492_v22 }
 0x278   : > { %1037 = vtanh.f32 %v593_v23 }
 0x279   : > { %1039 = vtanh.f32 %v588_v25 }
 0x27e   : > { %v1034_v26 = vpop.eup %1033 }
 0x27f   : > { %v1036_v27 = vpop.eup %1035 }
 0x280   : > { %v963_v28 = vpack.c.bf16 %v1034_v26, %v1036_v27 }
 0x282   : > { %v1038_v29 = vpop.eup %1037  ;;  %964 = vmatprep.subr.bf16.mxu0 %v963_v28  ;;  %971 = vmatprep.subr.bf16.mxu1 %v963_v28 }
 0x283   : > { %v1040_v30 = vpop.eup %1039  ;;  %966 = vmatpush3.bf16.msra.mxu0 %v963_v28  ;;  %973 = vmatpush3.bf16.msra.mxu1 %v963_v28 }
 0x284   : > { %v967_v31 = vpack.c.bf16 %v1038_v29, %v1040_v30 }
 0x286   : > { %968 = vmatprep.subr.bf16.mxu0 %v967_v31  ;;  %972 = vmatprep.subr.bf16.mxu1 %v967_v31 }
 0x287   : > { %970 = vmatpush3.bf16.msra.mxu0 %v967_v31  ;;  %974 = vmatpush3.bf16.msra.mxu1 %v967_v31 }
 0x28a   : > { %942 = vmatmul.mubr.msk.f32.vlgmr.msra.gmra.mrb[4].mxu0 %vm367_vm0, %v867_v32  ;;  %945 = vmatmul.mubr.msk.f32.vlgmr.msra.gmra.mrb[4].mxu1 %vm367_vm0, %v869_v33 }
 0x35d   : > { %v943_v37 = vpop.f32.mrb[4].mxu0  ;;  %v946_v38 = vpop.f32.mrb[4].mxu1 }
 0x35e   : > { %v714_v39 = vadd.f32 %v943_v37, %v618_v35  ;;  %v708_v40 = vpop.f32.mrb[5].mxu0  ;;  %v718_v41 = vpop.f32.mrb[5].mxu1  ;;  %v724_v45 = vadd.f32 %v946_v38, %v628_v42 }
 0x35f   : > { %v709_v43 = vadd.f32 %v708_v40, %v613_v34  ;;  %v719_v44 = vadd.f32 %v718_v41, %v623_v36 }
 0x360   : > { %1041 = vtanh.f32 %v714_v39 }
 0x361   : > { %1043 = vtanh.f32 %v709_v43 }
 0x362   : > { %1045 = vtanh.f32 %v719_v44 }
 0x363   : > { %1047 = vtanh.f32 %v724_v45 }
 0x36a   : > { %v1042_v47 = vpop.eup %1041 }
 0x36b   : > { %v756_v49 = vmul.f32 %v1042_v47, %v743_v48  ;;  %v1044_v50 = vpop.eup %1043 }
 0x36c   : > { %v1046_v51 = vpop.eup %1045  ;;  %v755_v52 = vmul.f32 %v1044_v50, %v738_v46 }
 0x36d   : > { %v1048_v53 = vpop.eup %1047  ;;  %v757_v56 = vmul.f32 %v1046_v51, %v748_v54 }
 0x36e   : > { %v759_v55 = vadd.f32 %v756_v49, %v755_v52  ;;  %v758_v58 = vmul.f32 %v1048_v53, %v753_v57 }
 0x370   : > { %v760_v59 = vadd.f32 %v759_v55, %v757_v56 }
 0x372   : > { %v761_v61 = vadd.f32 %v760_v59, %v758_v58 }
 0x374   : > { %v762_v62 = vrot.slane %v761_v61, 4 }
 0x376   : > { %v763_v0 = vadd.f32 %v762_v62, %v761_v61 }
 0x378   : > { %v764_v1 = vrot.slane %v763_v0, 2 }
 0x37a   : > { %v765_v3 = vadd.f32 %v764_v1, %v763_v0 }
 0x37c   : > { %v766_v5 = vrot.slane %v765_v3, 1 }
 0x37e   : > { %v767_v7 = vadd.f32 %v766_v5, %v765_v3 }
 0x380   : > { %v778_v8 = vadd.f32 %v777_v6, %v767_v7 }
 0x382   : > { %779 = vst [vmem:[%s268_s17] sm:$0x1] %v778_v8 }
 0x383   : > { %1062 = shalt.err (!%p1059_p3)
}
 0x384   : > { %s1063_s30 = scalar_lea.hbm %s1336_s21, 16  ;;  %s1067_s14 = scalar_lea.hbm %s1385_s7, 32 }
 0x385   : > { %p1064_p4 = scmp.ne.s32.totalorder %s1336_s21, %s1063_s30  ;;  %p1068_p9 = scmp.lt.u32.totalorder %s1336_s21, %s1385_s7 }
 0x386   : > { %p1069_p10 = scmp.lt.u32.totalorder %s1067_s14, %s1063_s30  ;;  %p1071_p12 = scmp.lt.u32.totalorder %s1063_s30, %s1336_s21 }
 0x387   : > { %p1065_p7 = pnand %p1064_p4, %p1196_p5 }
 0x388   : > { %p1070_p11 = por %p1069_p10, %p1068_p9 }
 0x389   : > { %p1066_p8 = pneg %p1065_p7 }
 0x38a   : > { %p1072_p13 = por %p1071_p12, %p1070_p11 }
 0x38c   : > { %p1073_p0 = pnand %p1072_p13, %p1066_p8 }
 0x38e   : > { %1076 = shalt.err (!%p1073_p0)
}
 0x38f   : > { %975 = dma.vmem_to_hbm [thread:$0]  (%p1196_p5), %s1338_s18, 16, %s1336_s21, %s781_s22  }
 0x390 PF: > { %p981_p1 = scmp.ge.s32.totalorder %s1111_s29, 2  ;;  %s805_s17 = sand.u32 1, %s1099_s26  }
 0x391   : > { %s806_s19 = scalar_lea.sflag [#allocation4], %s805_s17 }
 0x392   : > { %p978_p2 = pnand %p981_p1, %p1200_p6 }
 0x394   : > { %1094 = dma.done.wait (!%p978_p2), %s806_s19, 16  }
 0x395   : > { %1096 = vsyncadd (!%p978_p2), %s806_s19, 4294967280  ;;  %p19_p3 = scmp.ge.s32.totalorder %s1183_s8, 4   ;;  %s1388_s26 = smov %s1103_s27 }
 0x396   : > { %s1389_s27 = smov %s1107_s28  ;;  %s1390_s28 = smov %s1194_s11 }
 0x397   : > { %s1391_s29 = smov %s1183_s8  ;;  %21 = sbr.rel (!%p19_p3) target bundleno = 6 (0x6), region = 87 }
 0x39e   :  { %810 = vsyncpa [#allocation4], 1 }
 0x39f   :  { %812 = vsyncpa [#allocation4 + $0x1], 1 }

</bundles_post_ra>
